<compile_context>
chip_gen: v6e
topology: v6e:2x2x1
jax: 0.10.0
libtpu: 0.0.40
codegen_flags: <defaults>
</compile_context>

<pallas_src>
import functools

import jax
import jax.numpy as jnp
from jax import lax
from jax.experimental import pallas as pl
from jax.experimental.pallas import tpu as pltpu


# ----------------------------------------------------------------------------- helpers
def _round_up(x, m):
    return (x + m - 1) // m * m


_O_TILE_BUDGET = 6 * 1024 * 1024   # bytes per streamed O tile (double-buffered by the pipeline)


def _choose_full_tile(nyp, d, itemsize):
    """Full-catalog NY tile: largest of {2048,1024,512} that divides the pre-padded table,
    fits the VMEM budget, and (when possible) leaves >=2 tiles so both v7x TCs get work."""
    cands = [t for t in (2048, 1024, 512)
             if nyp % t == 0 and t * d * itemsize <= _O_TILE_BUDGET]
    if not cands:
        return 512 if nyp % 512 == 0 else 128
    multi = [t for t in cands if nyp // t >= 2]
    return multi[0] if multi else cands[0]


def _choose_sampled_tile(ny, d, itemsize):
    """Sampled-candidate NY tile: one lane-dense tile when tiny, otherwise ~half of NY
    (>=2 tiles for v7x) capped by the VMEM budget."""
    nyp = _round_up(ny, 128)
    if nyp <= 512:
        return int(nyp)
    tn = (_O_TILE_BUDGET // max(1, d * itemsize)) // 128 * 128
    tn = max(512, min(tn, 2048))
    tn = min(tn, _round_up((nyp + 1) // 2, 128))
    return int(tn)


def _score_vmem_limit(bp, d, tile_n, o_itemsize):
    """Actual double-buffered footprint of the score kernel, with 2x headroom, capped at
    32 MiB (safe on v7x's 64 MiB VMEM as well as v5e/v6e)."""
    need = (2 * tile_n * d * o_itemsize      # 2x streamed O tile
            + 2 * bp * tile_n * 4            # 2x output tile (f32)
            + 2 * tile_n * 4                 # 2x bias tile
            + 2 * bp * d * 4)                # resident h
    return int(min(32 * 1024 * 1024, max(16 * 1024 * 1024, 2 * need)))


# ----------------------------------------------------------------------------- kernels
def gru_cell_kernel(e_ref, h_ref, wih_ref, whh_ref, bi_ref, bh_ref, hnew_ref):
    """One PyTorch nn.GRUCell step, two merged gate matmuls.

    e_ref, h_ref : [B, d]
    wih_ref      : [d, 3d]  (= W_ih.T, gate order r|z|n)
    whh_ref      : [d, 3d]  (= W_hh.T)
    bi_ref,bh_ref: [1, 3d]
    hnew_ref     : [B, d]
    """
    f32 = jnp.float32
    E = e_ref[...]
    H = h_ref[...]
    d = H.shape[1]
    gi = jnp.dot(E, wih_ref[...], preferred_element_type=f32) + bi_ref[...]
    gh = jnp.dot(H, whh_ref[...], preferred_element_type=f32) + bh_ref[...]
    r = jax.nn.sigmoid(gi[:, 0:d] + gh[:, 0:d])
    z = jax.nn.sigmoid(gi[:, d:2 * d] + gh[:, d:2 * d])
    n = jnp.tanh(gi[:, 2 * d:3 * d] + r * gh[:, 2 * d:3 * d])
    hnew_ref[...] = ((1.0 - z) * n + z * H).astype(hnew_ref.dtype)


def score_kernel(h_ref, o_ref, by_ref, r_ref):
    """One NY-tile of R = h' @ O.T + By.T.

    h_ref  : [B, d]   f32, resident across all grid steps (cast to o dtype in-kernel)
    o_ref  : [TN, d]  streamed candidate-embedding tile (natural gather layout, bf16/f32)
    by_ref : [1, TN]  candidate bias tile
    r_ref  : [B, TN]  output score tile (f32)
    """
    h = h_ref[...].astype(o_ref.dtype)
    scores = lax.dot_general(
        h, o_ref[...],
        dimension_numbers=(((1,), (1,)), ((), ())),   # contract last dims: h @ o.T
        preferred_element_type=jnp.float32)
    r_ref[...] = (scores + by_ref[...]).astype(r_ref.dtype)


# ----------------------------------------------------------------------------- param prep
def prepare_params(params, score_dtype=jnp.bfloat16, full_pad=512):
    """One-time weight preparation (outside the per-step hot path):
      * GRU weights transposed to [d,3d], biases reshaped to [1,3d] rows.
      * Full-catalog scoring table pre-padded to a multiple of `full_pad` rows and pre-cast
        to `score_dtype`; By pre-transposed/padded.  No per-call pad/cast of the catalog.
    """
    W_ih, W_hh = params["W_ih"], params["W_hh"]      # [3d, d]
    b_ih, b_hh = params["b_ih"], params["b_hh"]      # [3d]
    Wy, By = params["Wy"], params["By"]              # [n_items, d], [n_items, 1]
    d = W_hh.shape[1]
    n_items = Wy.shape[0]
    nyp = _round_up(n_items, full_pad)
    # TODO(synk): offer int8 (v5e/v6e) or fp8-e4m3 (v7x) quantized O streams with per-row
    # scales for a further 2x HBM-traffic cut; bf16 is the portable default here.
    # TODO(synk): for d >= 512, also store Wih_t/Whh_t in bf16 to halve per-step GRU traffic.
    return {
        "Wy": Wy,
        "By": By,
        "Wih_t": jnp.asarray(W_ih.T),                          # [d, 3d]
        "Whh_t": jnp.asarray(W_hh.T),                          # [d, 3d]
        "b_i": b_ih.reshape(1, 3 * d),
        "b_h": b_hh.reshape(1, 3 * d),
        "Wy_score": jnp.pad(Wy, ((0, nyp - n_items), (0, 0))).astype(score_dtype),
        "By_score": jnp.pad(By.reshape(1, n_items), ((0, 0), (0, nyp - n_items))),
    }


# ----------------------------------------------------------------------------- forward
@functools.partial(jax.jit, static_argnames=("tile_n",))
def gru4rec_forward(X, H0, prep, Y=None, *, tile_n=None):
    """GRU4RecModel.forward(X, H, Y, training=False), constrained embedding, layers=[d].

    X : [B]   int32 input item ids
    H0: [B,d] float32 hidden state of the single GRU layer
    Y : [NY]  int32 candidate item ids, or None to score the full catalog
    Returns (R [B, NY], H_new [B, d]).
    """
    Wy, By = prep["Wy"], prep["By"]
    B, d = H0.shape
    n_items = Wy.shape[0]
    score_dtype = prep["Wy_score"].dtype
    o_itemsize = jnp.dtype(score_dtype).itemsize

    # ---- embedding lookups (XLA glue) -------------------------------------------------
    E = jnp.take(Wy, X, axis=0)                                   # [B, d]
    if Y is None:
        # Full catalog: pre-padded / pre-cast table, zero per-call preparation traffic.
        O_p = prep["Wy_score"]                                    # [NYp, d] score_dtype
        by_p = prep["By_score"]                                   # [1, NYp] f32
        NY = n_items
        NYp = O_p.shape[0]
        if tile_n is None:
            tile_n = _choose_full_tile(NYp, d, o_itemsize)
        assert tile_n % 128 == 0 and NYp % tile_n == 0, \
            "full-catalog tile_n must be a multiple of 128 and divide the pre-padded table"
    else:
        # TODO(synk): fuse this sampled-Y gather into the score kernel (PrefetchScalarGridSpec
        # for Y + manual DMA gather into a double-buffered VMEM tile) to avoid the [NY,d] copy.
        NY = Y.shape[0]
        if tile_n is None:
            tile_n = _choose_sampled_tile(NY, d, o_itemsize)
        assert tile_n % 128 == 0, "tile_n must be a multiple of 128 (lane width)"
        NYp = _round_up(NY, tile_n)
        O = jnp.take(Wy, Y, axis=0)                               # [NY, d]
        O_p = jnp.pad(O, ((0, NYp - NY), (0, 0))).astype(score_dtype)
        by_p = jnp.pad(jnp.take(By, Y, axis=0).reshape(1, NY), ((0, 0), (0, NYp - NY)))

    # ---- batch padded to 8 sublanes ----------------------------------------------------
    Bp = _round_up(B, 8)
    E_p = jnp.pad(E, ((0, Bp - B), (0, 0)))
    H_p = jnp.pad(H0, ((0, Bp - B), (0, 0)))

    # ---- kernel 1: GRU cell (tiny, un-gridded, fully VMEM-resident; 2 merged matmuls) ---
    vmem = pl.BlockSpec(memory_space=pltpu.MemorySpace.VMEM)
    h_new_p = pl.pallas_call(
        gru_cell_kernel,
        out_shape=jax.ShapeDtypeStruct((Bp, d), jnp.float32),
        in_specs=[vmem] * 6,
        out_specs=vmem,
    )(E_p, H_p, prep["Wih_t"], prep["Whh_t"], prep["b_i"], prep["b_h"])

    # ---- kernel 2: scoring matmul, tiled + double-buffered over NY ("parallel") --------
    grid = (NYp // tile_n,)
    R_p = pl.pallas_call(
        score_kernel,
        out_shape=jax.ShapeDtypeStruct((Bp, NYp), jnp.float32),
        grid=grid,
        in_specs=[
            pl.BlockSpec((Bp, d), lambda j: (0, 0)),          # h: resident across tiles
            pl.BlockSpec((tile_n, d), lambda j: (j, 0)),      # O tile (streamed, bf16/f32)
            pl.BlockSpec((1, tile_n), lambda j: (0, j)),      # bias tile
        ],
        out_specs=pl.BlockSpec((Bp, tile_n), lambda j: (0, j)),
        compiler_params=pltpu.CompilerParams(
            dimension_semantics=("parallel",),                # shard NY tiles across TCs (v7x)
            vmem_limit_bytes=_score_vmem_limit(Bp, d, tile_n, o_itemsize),
        ),
    )(h_new_p, O_p, by_p)

    return R_p[:B, :NY], h_new_p[:B]


# ----------------------------------------------------------------------------- param init
def init_params(key, n_items, d):
    """Init mirroring GRU4RecModel.reset_parameters (shapes / distributions)."""
    def uniform_sigma(key, shape, dim0_scale=1, dim1_scale=1):
        sigma = (6.0 / (shape[0] / dim0_scale + shape[1] / dim1_scale)) ** 0.5
        return jax.random.uniform(key, shape, jnp.float32, -sigma, sigma)

    k1, k2, k3 = jax.random.split(key, 3)
    return {
        "Wy": uniform_sigma(k1, (n_items, d)),            # shared in/out embedding
        "By": jnp.zeros((n_items, 1), jnp.float32),       # item biases (init zero)
        "W_ih": uniform_sigma(k2, (3 * d, d), dim1_scale=3),
        "W_hh": uniform_sigma(k3, (3 * d, d), dim1_scale=3),
        "b_ih": jnp.zeros((3 * d,), jnp.float32),
        "b_hh": jnp.zeros((3 * d,), jnp.float32),
    }


# ----------------------------------------------------------------------------- reference
def gru4rec_forward_ref(X, H0, Y, params):
    Wy, By = params["Wy"], params["By"]
    W_ih, W_hh = params["W_ih"], params["W_hh"]
    b_ih, b_hh = params["b_ih"], params["b_hh"]
    d = H0.shape[1]

    E = Wy[X]
    if Y is None:
        O, Bias = Wy, By
    else:
        O, Bias = Wy[Y], By[Y]

    gi = E @ W_ih.T + b_ih
    gh = H0 @ W_hh.T + b_hh
    i_r, i_z, i_n = gi[:, :d], gi[:, d:2 * d], gi[:, 2 * d:]
    h_r, h_z, h_n = gh[:, :d], gh[:, d:2 * d], gh[:, 2 * d:]
    r = jax.nn.sigmoid(i_r + h_r)
    z = jax.nn.sigmoid(i_z + h_z)
    n = jnp.tanh(i_n + r * h_n)
    h_new = (1.0 - z) * n + z * H0
    R = h_new @ O.T + Bias.T
    return R, h_new


# ----------------------------------------------------------------------------- main
if __name__ == "__main__":
    n_items = 2048     # item catalog
    d = 128            # layers = [128]  (lane-aligned hidden size)
    batch = 8
    n_targets = 200    # sampled candidate items

    key = jax.random.PRNGKey(0)
    kp, kx, ky, kh = jax.random.split(key, 4)

    params = init_params(kp, n_items, d)
    prep_bf16 = prepare_params(params)                          # default: bf16 O stream
    prep_f32 = prepare_params(params, score_dtype=jnp.float32)  # exactness check

    X = jax.random.randint(kx, (batch,), 0, n_items, dtype=jnp.int32)
    Y = jax.random.randint(ky, (n_targets,), 0, n_items, dtype=jnp.int32)
    H0 = jax.random.normal(kh, (batch, d), jnp.float32) * 0.1

    R_ref, H_ref = gru4rec_forward_ref(X, H0, Y, params)
    R_full_ref, _ = gru4rec_forward_ref(X, H0, None, params)

    # --- sampled-candidate scoring, f32 stream (tight-tolerance correctness check) -------
    R, H_new = gru4rec_forward(X, H0, prep_f32, Y)
    jax.block_until_ready((R, H_new))
    assert R.shape == (batch, n_targets) and H_new.shape == (batch, d)
    assert jnp.allclose(H_new, H_ref, atol=1e-3, rtol=1e-3)
    assert jnp.allclose(R, R_ref, atol=1e-3, rtol=1e-3)

    # --- sampled-candidate scoring, default bf16 stream -----------------------------------
    # (extra error comes from streaming O AND h in bf16; f32 accumulation; fine for ranking)
    R_b, H_b = gru4rec_forward(X, H0, prep_bf16, Y)
    jax.block_until_ready((R_b, H_b))
    assert jnp.allclose(H_b, H_ref, atol=1e-3, rtol=1e-3)
    assert jnp.allclose(R_b, R_ref, atol=3e-2, rtol=3e-2)

    # --- full-catalog scoring (Y=None): pre-padded bf16 table, 2 x 1024-wide tiles ---------
    R_full, H_full = gru4rec_forward(X, H0, prep_bf16, None)
    jax.block_until_ready((R_full, H_full))
    assert R_full.shape == (batch, n_items)
    assert jnp.allclose(H_full, H_ref, atol=1e-3, rtol=1e-3)
    assert jnp.allclose(R_full, R_full_ref, atol=3e-2, rtol=3e-2)

    print("KERNEL_OK")
</pallas_src>

<mosaic_0001>
module attributes {stable_mosaic.version = 11 : i64} {
  func.func @score_kernel(%arg0: i32, %arg1: memref<8x128xf32, #tpu.memory_space<vmem>>, %arg2: memref<256x128xf32, #tpu.memory_space<vmem>>, %arg3: memref<1x256xf32, #tpu.memory_space<vmem>>, %arg4: memref<8x256xf32, #tpu.memory_space<vmem>>) attributes {dimension_semantics = [#tpu.dimension_semantics<parallel>], iteration_bounds = array<i64: 1>, scalar_prefetch = 0 : i64, scratch_operands = 0 : i64, tpu.core_type = #tpu.core_type<tc>, window_params = [{pipeline_mode = #tpu.pipeline_mode<synchronous>, transform_indices = @transform_0, window_bounds = array<i64: 8, 128>}, {transform_indices = @transform_1, window_bounds = array<i64: 256, 128>}, {transform_indices = @transform_2, window_bounds = array<i64: 1, 256>}, {transform_indices = @transform_3, window_bounds = array<i64: 8, 256>}]} {
    %c0 = arith.constant 0 : index
    %c0_0 = arith.constant 0 : index
    %0 = vector.load %arg1[%c0, %c0_0] : memref<8x128xf32, #tpu.memory_space<vmem>>, vector<8x128xf32>
    %c0_1 = arith.constant 0 : index
    %c0_2 = arith.constant 0 : index
    %1 = vector.load %arg2[%c0_1, %c0_2] : memref<256x128xf32, #tpu.memory_space<vmem>>, vector<256x128xf32>
    %cst = arith.constant dense<0.000000e+00> : vector<8x256xf32>
    %2 = tpu.matmul %0, %1, %cst {dimension_numbers = #tpu.dot_dimension_numbers<[1], [1], [0], [0], [0, 0, 1, 0], [], []>} : vector<8x128xf32>, vector<256x128xf32>, vector<8x256xf32> -> vector<8x256xf32>
    %c0_3 = arith.constant 0 : index
    %c0_4 = arith.constant 0 : index
    %3 = vector.load %arg3[%c0_3, %c0_4] : memref<1x256xf32, #tpu.memory_space<vmem>>, vector<1x256xf32>
    %4 = vector.broadcast %3 : vector<1x256xf32> to vector<8x256xf32>
    %5 = arith.addf %2, %4 : vector<8x256xf32>
    %c0_5 = arith.constant 0 : index
    %c0_6 = arith.constant 0 : index
    %6 = vector.load %arg4[%c0_5, %c0_6] : memref<8x256xf32, #tpu.memory_space<vmem>>, vector<8x256xf32>
    tpu.vector_store %arg4[%c0_5, %c0_6], %5 {strides = array<i32>} : memref<8x256xf32, #tpu.memory_space<vmem>>, vector<8x256xf32>,
    return
  }
  func.func @transform_0(%arg0: i32) -> (i32, i32) {
    %c0_i32 = arith.constant 0 : i32
    %c0_i32_0 = arith.constant 0 : i32
    %c0_i32_1 = arith.constant 0 : i32
    return %c0_i32, %c0_i32_0 : i32, i32
  }
  func.func @transform_1(%arg0: i32) -> (i32, i32) {
    %c0_i32 = arith.constant 0 : i32
    %c0_i32_0 = arith.constant 0 : i32
    return %arg0, %c0_i32 : i32, i32
  }
  func.func @transform_2(%arg0: i32) -> (i32, i32) {
    %c0_i32 = arith.constant 0 : i32
    %c0_i32_0 = arith.constant 0 : i32
    return %c0_i32, %arg0 : i32, i32
  }
  func.func @transform_3(%arg0: i32) -> (i32, i32) {
    %c0_i32 = arith.constant 0 : i32
    %c0_i32_0 = arith.constant 0 : i32
    return %c0_i32, %arg0 : i32, i32
  }
}

module attributes {stable_mosaic.version = 11 : i64} {
  func.func @gru_cell_kernel(%arg0: memref<8x128xf32, #tpu.memory_space<vmem>>, %arg1: memref<8x128xf32, #tpu.memory_space<vmem>>, %arg2: memref<128x384xf32, #tpu.memory_space<vmem>>, %arg3: memref<128x384xf32, #tpu.memory_space<vmem>>, %arg4: memref<1x384xf32, #tpu.memory_space<vmem>>, %arg5: memref<1x384xf32, #tpu.memory_space<vmem>>, %arg6: memref<8x128xf32, #tpu.memory_space<vmem>>) attributes {dimension_semantics = [], scalar_prefetch = 0 : i64, scratch_operands = 0 : i64, tpu.core_type = #tpu.core_type<tc>} {
    %c0 = arith.constant 0 : index
    %c0_0 = arith.constant 0 : index
    %0 = vector.load %arg0[%c0, %c0_0] : memref<8x128xf32, #tpu.memory_space<vmem>>, vector<8x128xf32>
    %c0_1 = arith.constant 0 : index
    %c0_2 = arith.constant 0 : index
    %1 = vector.load %arg1[%c0_1, %c0_2] : memref<8x128xf32, #tpu.memory_space<vmem>>, vector<8x128xf32>
    %c0_3 = arith.constant 0 : index
    %c0_4 = arith.constant 0 : index
    %2 = vector.load %arg2[%c0_3, %c0_4] : memref<128x384xf32, #tpu.memory_space<vmem>>, vector<128x384xf32>
    %cst = arith.constant dense<0.000000e+00> : vector<8x384xf32>
    %3 = tpu.matmul %0, %2, %cst {dimension_numbers = #tpu.dot_dimension_numbers<[1], [0], [0], [1], [0, 0, 1, 1], [], []>} : vector<8x128xf32>, vector<128x384xf32>, vector<8x384xf32> -> vector<8x384xf32>
    %c0_5 = arith.constant 0 : index
    %c0_6 = arith.constant 0 : index
    %4 = vector.load %arg4[%c0_5, %c0_6] : memref<1x384xf32, #tpu.memory_space<vmem>>, vector<1x384xf32>
    %5 = vector.broadcast %4 : vector<1x384xf32> to vector<8x384xf32>
    %6 = arith.addf %3, %5 : vector<8x384xf32>
    %c0_7 = arith.constant 0 : index
    %c0_8 = arith.constant 0 : index
    %7 = vector.load %arg3[%c0_7, %c0_8] : memref<128x384xf32, #tpu.memory_space<vmem>>, vector<128x384xf32>
    %cst_9 = arith.constant dense<0.000000e+00> : vector<8x384xf32>
    %8 = tpu.matmul %1, %7, %cst_9 {dimension_numbers = #tpu.dot_dimension_numbers<[1], [0], [0], [1], [0, 0, 1, 1], [], []>} : vector<8x128xf32>, vector<128x384xf32>, vector<8x384xf32> -> vector<8x384xf32>
    %c0_10 = arith.constant 0 : index
    %c0_11 = arith.constant 0 : index
    %9 = vector.load %arg5[%c0_10, %c0_11] : memref<1x384xf32, #tpu.memory_space<vmem>>, vector<1x384xf32>
    %10 = vector.broadcast %9 : vector<1x384xf32> to vector<8x384xf32>
    %11 = arith.addf %8, %10 : vector<8x384xf32>
    %12 = vector.extract_strided_slice %6 {offsets = [0, 0], sizes = [8, 128], strides = [1, 1]} : vector<8x384xf32> to vector<8x128xf32>
    %13 = vector.extract_strided_slice %11 {offsets = [0, 0], sizes = [8, 128], strides = [1, 1]} : vector<8x384xf32> to vector<8x128xf32>
    %14 = arith.addf %12, %13 : vector<8x128xf32>
    %15 = arith.negf %14 : vector<8x128xf32>
    %16 = math.exp %15 : vector<8x128xf32>
    %cst_12 = arith.constant 1.000000e+00 : f32
    %17 = vector.broadcast %cst_12 : f32 to vector<8x128xf32>
    %18 = arith.addf %17, %16 : vector<8x128xf32>
    %19 = arith.divf %17, %18 : vector<8x128xf32>
    %20 = vector.extract_strided_slice %6 {offsets = [0, 128], sizes = [8, 128], strides = [1, 1]} : vector<8x384xf32> to vector<8x128xf32>
    %21 = vector.extract_strided_slice %11 {offsets = [0, 128], sizes = [8, 128], strides = [1, 1]} : vector<8x384xf32> to vector<8x128xf32>
    %22 = arith.addf %20, %21 : vector<8x128xf32>
    %23 = arith.negf %22 : vector<8x128xf32>
    %24 = math.exp %23 : vector<8x128xf32>
    %cst_13 = arith.constant 1.000000e+00 : f32
    %25 = vector.broadcast %cst_13 : f32 to vector<8x128xf32>
    %26 = arith.addf %25, %24 : vector<8x128xf32>
    %27 = arith.divf %25, %26 : vector<8x128xf32>
    %28 = vector.extract_strided_slice %6 {offsets = [0, 256], sizes = [8, 128], strides = [1, 1]} : vector<8x384xf32> to vector<8x128xf32>
    %29 = vector.extract_strided_slice %11 {offsets = [0, 256], sizes = [8, 128], strides = [1, 1]} : vector<8x384xf32> to vector<8x128xf32>
    %30 = arith.mulf %19, %29 : vector<8x128xf32>
    %31 = arith.addf %28, %30 : vector<8x128xf32>
    %32 = math.tanh %31 : vector<8x128xf32>
    %cst_14 = arith.constant 1.000000e+00 : f32
    %33 = vector.broadcast %cst_14 : f32 to vector<8x128xf32>
    %34 = arith.subf %33, %27 : vector<8x128xf32>
    %35 = arith.mulf %34, %32 : vector<8x128xf32>
    %36 = arith.mulf %27, %1 : vector<8x128xf32>
    %37 = arith.addf %35, %36 : vector<8x128xf32>
    %c0_15 = arith.constant 0 : index
    %c0_16 = arith.constant 0 : index
    %38 = vector.load %arg6[%c0_15, %c0_16] : memref<8x128xf32, #tpu.memory_space<vmem>>, vector<8x128xf32>
    tpu.vector_store %arg6[%c0_15, %c0_16], %37 {strides = array<i32>} : memref<8x128xf32, #tpu.memory_space<vmem>>, vector<8x128xf32>,
    return
  }
}

</mosaic_0001>

<bundles_post_ra>
// kernel: gru4rec_forward.3
= control target key start
LH: loop header
LB: loop body
LE: loop exit
PB: predicated region body
PF: predicated region fallthrough
CT: control target
= control target key end

     0   :  { %s330_s0 = inlined_call_operand.vmem [shape: f32[8,128], index: 0, kind: input, shape index: {}]   ;;  %s331_s1 = inlined_call_operand.vmem [shape: f32[256,128], index: 1, kind: input, shape index: {}]   ;;  %s332_s2 = inlined_call_operand.vmem [shape: f32[1,256], index: 2, kind: input, shape index: {}]   ;;  %s333_s3 = inlined_call_operand.hbm [shape: f32[8,256], index: 3, kind: output, shape index: {}]  }
   0x1   :  { %v47_v0 = vld [vmem:[%s331_s1 + $0xf8] sm:$0xff]  ;;  %v46_v2 = vld [vmem:[%s331_s1 + $0xf0] sm:$0xff]  ;;  %v45_v4 = vld [vmem:[%s331_s1 + $0xe8] sm:$0xff] }
   0x2   :  { %v31_v1 = vld [vmem:[%s331_s1 + $0x78] sm:$0xff]  ;;  %147 = vmatprep.subr.mxu0 %v47_v0  ;;  %v30_v3 = vld [vmem:[%s331_s1 + $0x70] sm:$0xff]  ;;  %v29_v5 = vld [vmem:[%s331_s1 + $0x68] sm:$0xff] }
   0x3   :  { %148 = vmatpush3.xpose.msra.mxu0 %v31_v1  ;;  %v44_v6 = vld [vmem:[%s331_s1 + $0xe0] sm:$0xff] }
   0x4   :  { %149 = vmatprep.subr.mxu0 %v46_v2  ;;  %v15_v7 = vld [vmem:[%s330_s0] sm:$0xff] }
   0x5   :  { %v28_v8 = vld [vmem:[%s331_s1 + $0x60] sm:$0xff]  ;;  %179 = vmatprep.mubr.f32.mxu0 %v15_v7 }
   0x7   :  { %150 = vmatpush3.xpose.msra.mxu0 %v30_v3 }
   0x8   :  { %151 = vmatprep.subr.mxu0 %v45_v4 }
   0xb   :  { %152 = vmatpush3.xpose.msra.mxu0 %v29_v5 }
   0xc   :  { %153 = vmatprep.subr.mxu0 %v44_v6 }
   0xd   :  { %8 = vsyncpa [#allocation3], 0  ;;  %v43_v9 = vld [vmem:[%s331_s1 + $0xd8] sm:$0xff]  ;;  %v42_v11 = vld [vmem:[%s331_s1 + $0xd0] sm:$0xff]  ;;  %v50_v33 = vlaneseq  ;;  %s204_s24 = smov [#allocation2]  }
   0xe   :  { %v27_v10 = vld [vmem:[%s331_s1 + $0x58] sm:$0xff]  ;;  %v26_v12 = vld [vmem:[%s331_s1 + $0x50] sm:$0xff]  ;;  %v41_v13 = vld [vmem:[%s331_s1 + $0xc8] sm:$0xff]  ;;  %s139_s25 = sshll.u32 %s204_s24, 4  ;;  %s140_s25 = int_to_ptr.vmem [resolvable:$true] %s139_s25 }
   0xf   :  { %154 = vmatpush3.xpose.msra.mxu0 %v28_v8  ;;  %v25_v14 = vld [vmem:[%s331_s1 + $0x48] sm:$0xff]  ;;  %v40_v15 = vld [vmem:[%s331_s1 + $0xc0] sm:$0xff]  ;;  %v39_v17 = vld [vmem:[%s331_s1 + $0xb8] sm:$0xff]  ;;  %v51_v34 = vshrl.u32 %v50_v33, 7  ;;  %p187_p1 = scmp.lt.s32.totalorder %s140_s25, %s140_s25 }
  0x10   :  { %155 = vmatprep.subr.mxu0 %v43_v9  ;;  %v24_v16 = vld [vmem:[%s331_s1 + $0x40] sm:$0xff]  ;;  %v23_v18 = vld [vmem:[%s331_s1 + $0x38] sm:$0xff]  ;;  %v38_v19 = vld [vmem:[%s331_s1 + $0xb0] sm:$0xff] }
  0x11   :  { %v22_v20 = vld [vmem:[%s331_s1 + $0x30] sm:$0xff]  ;;  %v37_v21 = vld [vmem:[%s331_s1 + $0xa8] sm:$0xff]  ;;  %v36_v23 = vld [vmem:[%s331_s1 + $0xa0] sm:$0xff]  ;;  %v52_v35 = vsub.s32 0, %v51_v34  ;;  %v56_v37 = vsub.s32 1, %v51_v34 }
  0x12   :  { %v21_v22 = vld [vmem:[%s331_s1 + $0x28] sm:$0xff]  ;;  %v20_v24 = vld [vmem:[%s331_s1 + $0x20] sm:$0xff]  ;;  %v35_v25 = vld [vmem:[%s331_s1 + $0x98] sm:$0xff] }
  0x13   :  { %156 = vmatpush3.xpose.msra.mxu0 %v27_v10  ;;  %v19_v26 = vld [vmem:[%s331_s1 + $0x18] sm:$0xff]  ;;  %v34_v27 = vld [vmem:[%s331_s1 + $0x90] sm:$0xff]  ;;  %v33_v29 = vld [vmem:[%s331_s1 + $0x88] sm:$0xff] }
  0x14   :  { %157 = vmatprep.subr.mxu0 %v42_v11  ;;  %v18_v28 = vld [vmem:[%s331_s1 + $0x10] sm:$0xff]  ;;  %v17_v30 = vld [vmem:[%s331_s1 + $0x8] sm:$0xff]  ;;  %v32_v31 = vld [vmem:[%s331_s1 + $0x80] sm:$0xff] }
  0x15   :  { %v16_v32 = vld [vmem:[%s331_s1] sm:$0xff]  ;;  %s182_s1 = scalar_lea.vmem %s140_s25, 256 }
  0x16   :  { %v48_v36 = vld [vmem:[%s332_s2] sm:$0x3]  ;;  %p183_p0 = scmp.ne.s32.totalorder %s140_s25, %s182_s1  ;;  %p188_p2 = scmp.lt.s32.totalorder %s182_s1, %s182_s1 }
  0x17   :  { %158 = vmatpush3.xpose.msra.mxu0 %v26_v12  ;;  %v53_v38 = vrot.slane %v48_v36, %v52_v35  ;;  %v57_v39 = vrot.slane %v48_v36, %v56_v37 }
  0x18   :  { %159 = vmatprep.subr.mxu0 %v41_v13  ;;  %p189_p3 = por %p188_p2, %p187_p1 }
  0x1a   :  { %p190_p4 = pnand %p189_p3, %p183_p0 }
  0x1b   :  { %160 = vmatpush3.xpose.msra.mxu0 %v25_v14 }
  0x1c   :  { %161 = vmatprep.subr.mxu0 %v40_v15 }
  0x1f   :  { %162 = vmatpush3.xpose.msra.mxu0 %v24_v16 }
  0x20   :  { %163 = vmatprep.subr.mxu0 %v39_v17 }
  0x23   :  { %164 = vmatpush3.xpose.msra.mxu0 %v23_v18 }
  0x24   :  { %165 = vmatprep.subr.mxu0 %v38_v19 }
  0x27   :  { %166 = vmatpush3.xpose.msra.mxu0 %v22_v20 }
  0x28   :  { %167 = vmatprep.subr.mxu0 %v37_v21 }
  0x2b   :  { %168 = vmatpush3.xpose.msra.mxu0 %v21_v22 }
  0x2c   :  { %169 = vmatprep.subr.mxu0 %v36_v23 }
  0x2f   :  { %170 = vmatpush3.xpose.msra.mxu0 %v20_v24 }
  0x30   :  { %171 = vmatprep.subr.mxu0 %v35_v25 }
  0x33   :  { %172 = vmatpush3.xpose.msra.mxu0 %v19_v26 }
  0x34   :  { %173 = vmatprep.subr.mxu0 %v34_v27 }
  0x37   :  { %174 = vmatpush3.xpose.msra.mxu0 %v18_v28 }
  0x38   :  { %175 = vmatprep.subr.mxu0 %v33_v29 }
  0x3b   :  { %176 = vmatpush3.xpose.msra.mxu0 %v17_v30 }
  0x3c   :  { %177 = vmatprep.subr.mxu0 %v32_v31 }
  0x3f   :  { %178 = vmatpush3.xpose.msra.mxu0 %v16_v32 }
  0x42   :  { %180 = vmatmul.mubr.f32.vlgmr.msra.gmra.mxu0 %v15_v7 }
 0x102   :  { %v126_v40 = vpop.f32.mrf.mxu0 }
 0x103   :  { %v127_v41 = vadd.f32 %v126_v40, %v53_v38 }
 0x104   :  { %v128_v42 = vpop.f32.mrf.mxu0 }
 0x105   :  { %131 = vst [vmem:[#allocation2] sm:$0xff] %v127_v41  ;;  %v129_v43 = vadd.f32 %v128_v42, %v57_v39 }
 0x107   :  { %132 = vst [vmem:[#allocation2 + $0x8] sm:$0xff] %v129_v43 }
 0x108   :  { %193 = shalt.err (!%p190_p4)
}
 0x109   :  { %142 = dma.vmem_to_hbm [thread:$0]  %s140_s25, 256, %s333_s3, [#allocation3]  }
 0x10a   :  { %202 = dma.done.wait [#allocation3], 256  }
 0x10b   :  { %203 = vsyncadd [#allocation3], 4294967040 }
 0x10c   :  { %146 = vsyncpa [#allocation3], 1 }

// kernel: gru4rec_forward.2
= control target key start
LH: loop header
LB: loop body
LE: loop exit
PB: predicated region body
PF: predicated region fallthrough
CT: control target
= control target key end

     0   :  { %v581_v3 = vmov 0.0   ;;  %vm582_vm0 = vmmov 0   ;;  %s964_s2 = inlined_call_operand.vmem [shape: f32[128,384], index: 2, kind: input, shape index: {}]   ;;  %s965_s0 = inlined_call_operand.vmem [shape: f32[8,128], index: 0, kind: input, shape index: {}]   ;;  %s966_s3 = inlined_call_operand.vmem [shape: f32[128,384], index: 3, kind: input, shape index: {}]   ;;  %s967_s1 = inlined_call_operand.vmem [shape: f32[8,128], index: 1, kind: input, shape index: {}]   ;;  %s968_s4 = inlined_call_operand.vmem [shape: f32[1,384], index: 4, kind: input, shape index: {}]   ;;  %s969_s5 = inlined_call_operand.vmem [shape: f32[1,384], index: 5, kind: input, shape index: {}]   ;;  %s970_s6 = inlined_call_operand.vmem [shape: f32[8,128], index: 6, kind: output, shape index: {}]  }
   0x1   :  { %v71_v0 = vld [vmem:[%s964_s2 + $0x170] sm:$0xff]  ;;  %v70_v1 = vld [vmem:[%s964_s2 + $0x168] sm:$0xff]  ;;  %v68_v2 = vld [vmem:[%s964_s2 + $0x158] sm:$0xff]  ;;  %154 = vmatprep.mubr.f32.mxu0 %v581_v3  ;;  %499 = vmatprep.subr.mxu1 %v581_v3 }
   0x2   :  { %90 = vmatprep.subr.mxu0 %v71_v0  ;;  %v67_v4 = vld [vmem:[%s964_s2 + $0x150] sm:$0xff]  ;;  %531 = vmatprep.mubr.msk.f32.mxu1 %vm582_vm0, %v581_v3  ;;  %v65_v5 = vld [vmem:[%s964_s2 + $0x140] sm:$0xff]  ;;  %v64_v6 = vld [vmem:[%s964_s2 + $0x138] sm:$0xff] }
   0x3   :  { %91 = vmatpush1.msra.mxu0 %v70_v1  ;;  %v62_v7 = vld [vmem:[%s964_s2 + $0x128] sm:$0xff]  ;;  %v61_v8 = vld [vmem:[%s964_s2 + $0x120] sm:$0xff]  ;;  %v59_v9 = vld [vmem:[%s964_s2 + $0x110] sm:$0xff] }
   0x4   :  { %92 = vmatprep.subr.mxu0 %v68_v2  ;;  %v58_v10 = vld [vmem:[%s964_s2 + $0x108] sm:$0xff]  ;;  %v56_v11 = vld [vmem:[%s964_s2 + $0xf8] sm:$0xff]  ;;  %v55_v12 = vld [vmem:[%s964_s2 + $0xf0] sm:$0xff] }
   0x5   :  { %93 = vmatpush1.msra.mxu0 %v67_v4  ;;  %v53_v13 = vld [vmem:[%s964_s2 + $0xe0] sm:$0xff]  ;;  %v52_v14 = vld [vmem:[%s964_s2 + $0xd8] sm:$0xff]  ;;  %v50_v16 = vld [vmem:[%s964_s2 + $0xc8] sm:$0xff] }
   0x6   :  { %94 = vmatprep.subr.mxu0 %v65_v5  ;;  %v72_v15 = vld [vmem:[%s964_s2 + $0x178] sm:$0xff]  ;;  %v69_v17 = vld [vmem:[%s964_s2 + $0x160] sm:$0xff]  ;;  %v66_v19 = vld [vmem:[%s964_s2 + $0x148] sm:$0xff] }
   0x7   :  { %95 = vmatpush1.msra.mxu0 %v64_v6  ;;  %500 = vmatpush3.msra.mxu1 %v72_v15  ;;  %v49_v18 = vld [vmem:[%s964_s2 + $0xc0] sm:$0xff]  ;;  %v47_v20 = vld [vmem:[%s964_s2 + $0xb0] sm:$0xff]  ;;  %v46_v21 = vld [vmem:[%s964_s2 + $0xa8] sm:$0xff] }
   0x8   :  { %96 = vmatprep.subr.mxu0 %v62_v7  ;;  %501 = vmatprep.subr.mxu1 %v581_v3  ;;  %v63_v22 = vld [vmem:[%s964_s2 + $0x130] sm:$0xff]  ;;  %v44_v23 = vld [vmem:[%s964_s2 + $0x98] sm:$0xff]  ;;  %v41_v26 = vld [vmem:[%s964_s2 + $0x80] sm:$0xff] }
   0x9   :  { %97 = vmatpush1.msra.mxu0 %v61_v8  ;;  %502 = vmatpush3.msra.mxu1 %v69_v17  ;;  %v43_v24 = vld [vmem:[%s964_s2 + $0x90] sm:$0xff]  ;;  %v60_v25 = vld [vmem:[%s964_s2 + $0x118] sm:$0xff]  ;;  %v57_v28 = vld [vmem:[%s964_s2 + $0x100] sm:$0xff] }
   0xa   :  { %98 = vmatprep.subr.mxu0 %v59_v9  ;;  %503 = vmatprep.subr.mxu1 %v581_v3  ;;  %v40_v27 = vld [vmem:[%s964_s2 + $0x78] sm:$0xff]  ;;  %v38_v29 = vld [vmem:[%s964_s2 + $0x68] sm:$0xff]  ;;  %v37_v30 = vld [vmem:[%s964_s2 + $0x60] sm:$0xff] }
   0xb   :  { %99 = vmatpush1.msra.mxu0 %v58_v10  ;;  %504 = vmatpush3.msra.mxu1 %v66_v19  ;;  %v54_v31 = vld [vmem:[%s964_s2 + $0xe8] sm:$0xff]  ;;  %v35_v32 = vld [vmem:[%s964_s2 + $0x50] sm:$0xff]  ;;  %v32_v35 = vld [vmem:[%s964_s2 + $0x38] sm:$0xff] }
   0xc   :  { %100 = vmatprep.subr.mxu0 %v56_v11  ;;  %505 = vmatprep.subr.mxu1 %v581_v3  ;;  %v34_v33 = vld [vmem:[%s964_s2 + $0x48] sm:$0xff]  ;;  %v51_v34 = vld [vmem:[%s964_s2 + $0xd0] sm:$0xff]  ;;  %v48_v37 = vld [vmem:[%s964_s2 + $0xb8] sm:$0xff] }
   0xd   :  { %101 = vmatpush1.msra.mxu0 %v55_v12  ;;  %506 = vmatpush3.msra.mxu1 %v63_v22  ;;  %v31_v36 = vld [vmem:[%s964_s2 + $0x30] sm:$0xff]  ;;  %v29_v38 = vld [vmem:[%s964_s2 + $0x20] sm:$0xff]  ;;  %v28_v39 = vld [vmem:[%s964_s2 + $0x18] sm:$0xff] }
   0xe   :  { %102 = vmatprep.subr.mxu0 %v53_v13  ;;  %507 = vmatprep.subr.mxu1 %v581_v3  ;;  %v45_v40 = vld [vmem:[%s964_s2 + $0xa0] sm:$0xff]  ;;  %v26_v41 = vld [vmem:[%s964_s2 + $0x8] sm:$0xff]  ;;  %v277_v45 = vld [vmem:[%s966_s3 + $0x170] sm:$0xff] }
   0xf   :  { %103 = vmatpush1.msra.mxu0 %v52_v14  ;;  %508 = vmatpush3.msra.mxu1 %v60_v25  ;;  %v25_v42 = vld [vmem:[%s964_s2] sm:$0xff]  ;;  %v42_v43 = vld [vmem:[%s964_s2 + $0x88] sm:$0xff]  ;;  %v274_v47 = vld [vmem:[%s966_s3 + $0x158] sm:$0xff] }
  0x10   :  { %104 = vmatprep.subr.mxu0 %v50_v16  ;;  %509 = vmatprep.subr.mxu1 %v581_v3  ;;  %v23_v44 = vld [vmem:[%s965_s0] sm:$0xff]  ;;  %v276_v46 = vld [vmem:[%s966_s3 + $0x168] sm:$0xff]  ;;  %v39_v48 = vld [vmem:[%s964_s2 + $0x70] sm:$0xff] }
  0x11   :  { %105 = vmatpush1.msra.mxu0 %v49_v18  ;;  %510 = vmatpush3.msra.mxu1 %v57_v28  ;;  %v273_v49 = vld [vmem:[%s966_s3 + $0x150] sm:$0xff]  ;;  %v271_v50 = vld [vmem:[%s966_s3 + $0x140] sm:$0xff]  ;;  %v36_v51 = vld [vmem:[%s964_s2 + $0x58] sm:$0xff] }
  0x12   :  { %106 = vmatprep.subr.mxu0 %v47_v20  ;;  %511 = vmatprep.subr.mxu1 %v581_v3  ;;  %v270_v52 = vld [vmem:[%s966_s3 + $0x138] sm:$0xff]  ;;  %v268_v53 = vld [vmem:[%s966_s3 + $0x128] sm:$0xff]  ;;  %v33_v54 = vld [vmem:[%s964_s2 + $0x40] sm:$0xff] }
  0x13   :  { %107 = vmatpush1.msra.mxu0 %v46_v21  ;;  %512 = vmatpush3.msra.mxu1 %v54_v31  ;;  %v267_v55 = vld [vmem:[%s966_s3 + $0x120] sm:$0xff]  ;;  %v265_v56 = vld [vmem:[%s966_s3 + $0x110] sm:$0xff]  ;;  %v30_v57 = vld [vmem:[%s964_s2 + $0x28] sm:$0xff] }
  0x14   :  { %108 = vmatprep.subr.mxu0 %v44_v23  ;;  %513 = vmatprep.subr.mxu1 %v581_v3  ;;  %v264_v58 = vld [vmem:[%s966_s3 + $0x108] sm:$0xff]  ;;  %v262_v59 = vld [vmem:[%s966_s3 + $0xf8] sm:$0xff]  ;;  %v27_v60 = vld [vmem:[%s964_s2 + $0x10] sm:$0xff] }
  0x15   :  { %109 = vmatpush1.msra.mxu0 %v43_v24  ;;  %514 = vmatpush3.msra.mxu1 %v51_v34  ;;  %v261_v61 = vld [vmem:[%s966_s3 + $0xf0] sm:$0xff]  ;;  %v259_v62 = vld [vmem:[%s966_s3 + $0xe0] sm:$0xff]  ;;  %v258_v63 = vld [vmem:[%s966_s3 + $0xd8] sm:$0xff] }
  0x16   :  { %110 = vmatprep.subr.mxu0 %v41_v26  ;;  %515 = vmatprep.subr.mxu1 %v581_v3  ;;  %v256_v0 = vld [vmem:[%s966_s3 + $0xc8] sm:$0xff]  ;;  %v278_v1 = vld [vmem:[%s966_s3 + $0x178] sm:$0xff]  ;;  %v255_v2 = vld [vmem:[%s966_s3 + $0xc0] sm:$0xff] }
  0x17   :  { %111 = vmatpush1.msra.mxu0 %v40_v27  ;;  %516 = vmatpush3.msra.mxu1 %v48_v37  ;;  %v253_v4 = vld [vmem:[%s966_s3 + $0xb0] sm:$0xff]  ;;  %v275_v5 = vld [vmem:[%s966_s3 + $0x160] sm:$0xff]  ;;  %v252_v6 = vld [vmem:[%s966_s3 + $0xa8] sm:$0xff] }
  0x18   :  { %112 = vmatprep.subr.mxu0 %v38_v29  ;;  %517 = vmatprep.subr.mxu1 %v581_v3  ;;  %v250_v7 = vld [vmem:[%s966_s3 + $0x98] sm:$0xff]  ;;  %v272_v8 = vld [vmem:[%s966_s3 + $0x148] sm:$0xff]  ;;  %v249_v9 = vld [vmem:[%s966_s3 + $0x90] sm:$0xff] }
  0x19   :  { %113 = vmatpush1.msra.mxu0 %v37_v30  ;;  %518 = vmatpush3.msra.mxu1 %v45_v40  ;;  %v247_v10 = vld [vmem:[%s966_s3 + $0x80] sm:$0xff]  ;;  %v269_v11 = vld [vmem:[%s966_s3 + $0x130] sm:$0xff]  ;;  %v246_v12 = vld [vmem:[%s966_s3 + $0x78] sm:$0xff] }
  0x1a   :  { %114 = vmatprep.subr.mxu0 %v35_v32  ;;  %519 = vmatprep.subr.mxu1 %v581_v3  ;;  %v244_v13 = vld [vmem:[%s966_s3 + $0x68] sm:$0xff]  ;;  %v266_v14 = vld [vmem:[%s966_s3 + $0x118] sm:$0xff]  ;;  %v243_v15 = vld [vmem:[%s966_s3 + $0x60] sm:$0xff] }
  0x1b   :  { %115 = vmatpush1.msra.mxu0 %v34_v33  ;;  %520 = vmatpush3.msra.mxu1 %v42_v43  ;;  %v241_v16 = vld [vmem:[%s966_s3 + $0x50] sm:$0xff]  ;;  %v263_v17 = vld [vmem:[%s966_s3 + $0x100] sm:$0xff]  ;;  %v240_v18 = vld [vmem:[%s966_s3 + $0x48] sm:$0xff] }
  0x1c   :  { %116 = vmatprep.subr.mxu0 %v32_v35  ;;  %521 = vmatprep.subr.mxu1 %v581_v3  ;;  %v238_v19 = vld [vmem:[%s966_s3 + $0x38] sm:$0xff]  ;;  %v260_v20 = vld [vmem:[%s966_s3 + $0xe8] sm:$0xff]  ;;  %v237_v21 = vld [vmem:[%s966_s3 + $0x30] sm:$0xff] }
  0x1d   :  { %117 = vmatpush1.msra.mxu0 %v31_v36  ;;  %522 = vmatpush3.msra.mxu1 %v39_v48  ;;  %v235_v22 = vld [vmem:[%s966_s3 + $0x20] sm:$0xff]  ;;  %v257_v23 = vld [vmem:[%s966_s3 + $0xd0] sm:$0xff]  ;;  %v234_v24 = vld [vmem:[%s966_s3 + $0x18] sm:$0xff] }
  0x1e   :  { %118 = vmatprep.subr.mxu0 %v29_v38  ;;  %523 = vmatprep.subr.mxu1 %v581_v3  ;;  %v232_v25 = vld [vmem:[%s966_s3 + $0x8] sm:$0xff]  ;;  %v254_v26 = vld [vmem:[%s966_s3 + $0xb8] sm:$0xff]  ;;  %v231_v27 = vld [vmem:[%s966_s3] sm:$0xff]  ;;  %v75_v38 = vlaneseq }
  0x1f   :  { %119 = vmatpush1.msra.mxu0 %v28_v39  ;;  %524 = vmatpush3.msra.mxu1 %v36_v51  ;;  %v919_v28 = vld [vmem:[%s967_s1] sm:$0xff]  ;;  %v248_v30 = vld [vmem:[%s966_s3 + $0x88] sm:$0xff]  ;;  %v245_v31 = vld [vmem:[%s966_s3 + $0x70] sm:$0xff] }
  0x20   :  { %120 = vmatprep.subr.mxu0 %v26_v41  ;;  %525 = vmatprep.subr.mxu1 %v581_v3  ;;  %v251_v29 = vld [vmem:[%s966_s3 + $0xa0] sm:$0xff]  ;;  %v242_v32 = vld [vmem:[%s966_s3 + $0x58] sm:$0xff]  ;;  %v236_v34 = vld [vmem:[%s966_s3 + $0x28] sm:$0xff]  ;;  %v76_v39 = vshrl.u32 %v75_v38, 7 }
  0x21   :  { %121 = vmatpush1.msra.mxu0 %v25_v42  ;;  %526 = vmatpush3.msra.mxu1 %v33_v54  ;;  %v239_v33 = vld [vmem:[%s966_s3 + $0x40] sm:$0xff]  ;;  %v233_v35 = vld [vmem:[%s966_s3 + $0x10] sm:$0xff] }
  0x22   :  { %155 = vmatmul.mubr.f32.vlgmr.msra.gmra.mxu0 %v23_v44  ;;  %296 = vmatprep.subr.mxu0 %v277_v45  ;;  %v77_v40 = vsub.s32 0, %v76_v39  ;;  %v73_v41 = vld [vmem:[%s968_s4] sm:$0x7] }
  0x23   :  { %297 = vmatpush1.msra.mxu0 %v276_v46  ;;  %527 = vmatprep.subr.mxu1 %v581_v3  ;;  %v279_v43 = vld [vmem:[%s969_s5] sm:$0x7]  ;;  %v81_v46 = vsub.s32 1, %v76_v39 }
  0x24   :  { %298 = vmatprep.subr.mxu0 %v274_v47  ;;  %528 = vmatpush3.msra.mxu1 %v30_v57  ;;  %v284_v45 = vrot.slane %v279_v43, %v77_v40 }
  0x25   :  { %299 = vmatpush1.msra.mxu0 %v273_v49  ;;  %529 = vmatprep.subr.mxu1 %v581_v3 }
  0x26   :  { %300 = vmatprep.subr.mxu0 %v271_v50  ;;  %530 = vmatpush3.msra.mxu1 %v27_v60  ;;  %v288_v50 = vrot.slane %v279_v43, %v81_v46 }
  0x27   :  { %301 = vmatpush1.msra.mxu0 %v270_v52  ;;  %360 = vmatprep.mubr.f32.mxu0 %v581_v3  ;;  %v82_v52 = vrot.slane %v73_v41, %v81_v46 }
  0x28   :  { %302 = vmatprep.subr.mxu0 %v268_v53  ;;  %534 = vmatprep.subr.mxu1 %v581_v3 }
  0x29   :  { %303 = vmatpush1.msra.mxu0 %v267_v55  ;;  %532 = vmatmul.mubr.f32.vlgmr.msra.gmra.mxu1 %v23_v44  ;;  %v78_v44 = vrot.slane %v73_v41, %v77_v40 }
  0x2a   :  { %304 = vmatprep.subr.mxu0 %v265_v56  ;;  %535 = vmatpush3.msra.mxu1 %v278_v1 }
  0x2b   :  { %305 = vmatpush1.msra.mxu0 %v264_v58  ;;  %536 = vmatprep.subr.mxu1 %v581_v3 }
  0x2c   :  { %306 = vmatprep.subr.mxu0 %v262_v59  ;;  %537 = vmatpush3.msra.mxu1 %v275_v5 }
  0x2d   :  { %307 = vmatpush1.msra.mxu0 %v261_v61  ;;  %538 = vmatprep.subr.mxu1 %v581_v3 }
  0x2e   :  { %308 = vmatprep.subr.mxu0 %v259_v62  ;;  %539 = vmatpush3.msra.mxu1 %v272_v8 }
  0x2f   :  { %309 = vmatpush1.msra.mxu0 %v258_v63  ;;  %540 = vmatprep.subr.mxu1 %v581_v3  ;;  %v85_v63 = vsub.s32 2, %v76_v39 }
  0x30   :  { %310 = vmatprep.subr.mxu0 %v256_v0  ;;  %541 = vmatpush3.msra.mxu1 %v269_v11 }
  0x31   :  { %311 = vmatpush1.msra.mxu0 %v255_v2  ;;  %542 = vmatprep.subr.mxu1 %v581_v3  ;;  %v292_v0 = vrot.slane %v279_v43, %v85_v63  ;;  %v86_v2 = vrot.slane %v73_v41, %v85_v63 }
  0x32   :  { %312 = vmatprep.subr.mxu0 %v253_v4  ;;  %543 = vmatpush3.msra.mxu1 %v266_v14 }
  0x33   :  { %313 = vmatpush1.msra.mxu0 %v252_v6  ;;  %544 = vmatprep.subr.mxu1 %v581_v3 }
  0x34   :  { %314 = vmatprep.subr.mxu0 %v250_v7  ;;  %545 = vmatpush3.msra.mxu1 %v263_v17 }
  0x35   :  { %315 = vmatpush1.msra.mxu0 %v249_v9  ;;  %546 = vmatprep.subr.mxu1 %v581_v3 }
  0x36   :  { %316 = vmatprep.subr.mxu0 %v247_v10  ;;  %547 = vmatpush3.msra.mxu1 %v260_v20 }
  0x37   :  { %317 = vmatpush1.msra.mxu0 %v246_v12  ;;  %548 = vmatprep.subr.mxu1 %v581_v3 }
  0x38   :  { %318 = vmatprep.subr.mxu0 %v244_v13  ;;  %549 = vmatpush3.msra.mxu1 %v257_v23 }
  0x39   :  { %319 = vmatpush1.msra.mxu0 %v243_v15  ;;  %550 = vmatprep.subr.mxu1 %v581_v3 }
  0x3a   :  { %320 = vmatprep.subr.mxu0 %v241_v16  ;;  %551 = vmatpush3.msra.mxu1 %v254_v26 }
  0x3b   :  { %321 = vmatpush1.msra.mxu0 %v240_v18  ;;  %552 = vmatprep.subr.mxu1 %v581_v3 }
  0x3c   :  { %322 = vmatprep.subr.mxu0 %v238_v19  ;;  %553 = vmatpush3.msra.mxu1 %v251_v29 }
  0x3d   :  { %323 = vmatpush1.msra.mxu0 %v237_v21  ;;  %554 = vmatprep.subr.mxu1 %v581_v3 }
  0x3e   :  { %324 = vmatprep.subr.mxu0 %v235_v22  ;;  %566 = vmatprep.mubr.msk.f32.mxu1 %vm582_vm0, %v581_v3 }
  0x3f   :  { %325 = vmatpush1.msra.mxu0 %v234_v24  ;;  %555 = vmatpush3.msra.mxu1 %v248_v30 }
  0x40   :  { %326 = vmatprep.subr.mxu0 %v232_v25  ;;  %556 = vmatprep.subr.mxu1 %v581_v3 }
  0x41   :  { %327 = vmatpush1.msra.mxu0 %v231_v27  ;;  %557 = vmatpush3.msra.mxu1 %v245_v31 }
  0x42   :  { %361 = vmatmul.mubr.f32.vlgmr.msra.gmra.mxu0 %v919_v28  ;;  %558 = vmatprep.subr.mxu1 %v581_v3 }
  0x43   :  { %559 = vmatpush3.msra.mxu1 %v242_v32 }
  0x44   :  { %560 = vmatprep.subr.mxu1 %v581_v3 }
  0x45   :  { %561 = vmatpush3.msra.mxu1 %v239_v33 }
  0x46   :  { %562 = vmatprep.subr.mxu1 %v581_v3 }
  0x47   :  { %563 = vmatpush3.msra.mxu1 %v236_v34 }
  0x48   :  { %564 = vmatprep.subr.mxu1 %v581_v3 }
  0x49   :  { %565 = vmatpush3.msra.mxu1 %v233_v35 }
  0x4a   :  { %567 = vmatmul.mubr.f32.vlgmr.msra.gmra.mxu1 %v919_v28 }
  0xe2   :  { %v156_v42 = vpop.f32.mrf.mxu0 }
  0xe3   :  { %v157_v48 = vadd.f32 %v156_v42, %v78_v44 }
  0xe4   :  { %v158_v3 = vpop.f32.mrf.mxu0 }
  0xe5   :  { %v159_v56 = vadd.f32 %v158_v3, %v82_v52 }
  0xe9   :  { %v227_v36 = vpop.f32.mrf.mxu1 }
  0xea   :  { %v228_v7 = vadd.f32 %v227_v36, %v86_v2 }
  0xeb   :  { %v533_v37 = vpop.f32.mrf.mxu1 }
 0x102   :  { %v362_v47 = vpop.f32.mrf.mxu0 }
 0x103   :  { %v363_v49 = vadd.f32 %v362_v47, %v284_v45 }
 0x104   :  { %v364_v51 = vpop.f32.mrf.mxu0 }
 0x105   :  { %v437_v53 = vadd.f32 %v363_v49, %v157_v48  ;;  %v365_v55 = vadd.f32 %v364_v51, %v288_v50 }
 0x107   :  { %v463_v54 = vmul.f32 -1.442695, %v437_v53  ;;  %v444_v57 = vadd.f32 %v365_v55, %v159_v56 }
 0x109   :  { %571 = vpow2.f32 %v463_v54  ;;  %v464_v58 = vmul.f32 -1.442695, %v444_v57 }
 0x10a   :  { %v433_v59 = vpop.f32.mrf.mxu1 }
 0x10b   :  { %573 = vpow2.f32 %v464_v58  ;;  %v434_v5 = vadd.f32 %v433_v59, %v292_v0 }
 0x10c   :  { %v568_v60 = vpop.f32.mrf.mxu1 }
 0x116   :  { %v572_v61 = vpop.eup %571 }
 0x117   :  { %v441_v62 = vadd.f32 1.0, %v572_v61 }
 0x118   :  { %v574_v1 = vpop.eup %573 }
 0x119   :  { %575 = vrcp.f32 %v441_v62  ;;  %v448_v4 = vadd.f32 1.0, %v574_v1 }
 0x11b   :  { %577 = vrcp.f32 %v448_v4 }
 0x126   :  { %v576_v6 = vpop.eup %575 }
 0x127   :  { %v451_v8 = vmul.f32 %v576_v6, %v434_v5 }
 0x128   :  { %v578_v10 = vpop.eup %577 }
 0x129   :  { %v452_v9 = vadd.f32 %v451_v8, %v228_v7  ;;  %v454_v11 = vsub.f32 1.0, %v578_v10  ;;  %v456_v13 = vmul.f32 %v578_v10, %v919_v28 }
 0x12b   :  { %579 = vtanh.f32 %v452_v9 }
 0x138   :  { %v580_v12 = vpop.eup %579 }
 0x139   :  { %v455_v14 = vmul.f32 %v580_v12, %v454_v11 }
 0x13b   :  { %v457_v15 = vadd.f32 %v456_v13, %v455_v14 }
 0x13d   :  { %458 = vst [vmem:[%s970_s6] sm:$0xff] %v457_v15 }

</bundles_post_ra>
